<compile_context>
chip_gen: v6e
topology: v6e:2x2x1
jax: 0.10.0
libtpu: 0.0.40
codegen_flags: <defaults>
</compile_context>

<pallas_src>
import functools

import jax
import jax.numpy as jnp
from jax.experimental import pallas as pl
from jax.experimental.pallas import tpu as pltpu

CONV_K = 5   # ConvBlock kernel size
ATT_K = 7    # SpatialAttention kernel size
BN_EPS = 1e-5


def conv_block_kernel(w_ref, xcol_ref, gamma_ref, beta_ref, w2_ref, b2_ref,
                      o_ref, *, seq_len):
    """Fused ConvBlock forward.

    w_ref     : (C_out, C_in*CONV_K)  VMEM  im2col conv weight
    xcol_ref  : (C_in*CONV_K, N*L)    VMEM  im2col input columns
    gamma_ref : (C_out, 1)            VMEM  BN weight
    beta_ref  : (C_out, 1)            VMEM  BN bias
    w2_ref    : (2*ATT_K,)            SMEM  attention taps [avg(7) | max(7)]
    b2_ref    : (1,)                  SMEM  attention conv bias
    o_ref     : (C_out, N*L)          VMEM  lane-dense output slab
    """
    c_out, nl = o_ref.shape
    L = seq_len

    # ---- Conv1d as a single MXU matmul (bias b1 omitted: cancels under BN) ----
    y = jnp.dot(w_ref[...], xcol_ref[...],
                preferred_element_type=jnp.float32)          # (C_out, N*L)

    # ---- BatchNorm1d (training-mode batch stats), single-pass + fused FMA ----
    mu = jnp.mean(y, axis=1, keepdims=True)                  # (C_out, 1)
    msq = jnp.mean(y * y, axis=1, keepdims=True)             # (C_out, 1)
    var = msq - mu * mu                                      # biased variance
    scale = gamma_ref[...] * jax.lax.rsqrt(var + BN_EPS)     # (C_out, 1)
    shift = beta_ref[...] - scale * mu                       # (C_out, 1)
    y = jnp.maximum(y * scale + shift, 0.0)                  # BN + ReLU, one pass

    # ---- SpatialAttention on the VPU (merged N*L lane axis) ----
    avg = jnp.sum(y, axis=0, keepdims=True) * (1.0 / c_out)  # (1, N*L)
    mx = jnp.max(y, axis=0, keepdims=True)                   # (1, N*L)

    apad = ATT_K // 2
    zpad = jnp.zeros((1, apad), jnp.float32)
    avg_p = jnp.concatenate([zpad, avg, zpad], axis=1)       # (1, N*L + 6)
    mx_p = jnp.concatenate([zpad, mx, zpad], axis=1)

    # In-sample position along L; masks enforce per-sample zero padding even
    # though the lane axis is the merged N*L axis.
    pos = jax.lax.broadcasted_iota(jnp.int32, (1, nl), 1) % L

    att = jnp.full((1, nl), b2_ref[0], jnp.float32)
    for k in range(ATT_K):                                   # 14 scalar FMAs (VPU)
        d = k - apad
        tap = (w2_ref[k] * avg_p[:, k:k + nl]
               + w2_ref[ATT_K + k] * mx_p[:, k:k + nl])
        if d != 0:
            valid = jnp.logical_and(pos + d >= 0, pos + d < L)
            tap = jnp.where(valid, tap, 0.0)
        att = att + tap
    att = jax.nn.sigmoid(att)                                # EUP, overlaps free

    o_ref[...] = (y * att).astype(o_ref.dtype)


def conv_block(x, w1, b1, gamma, beta, w2, b2):
    """x: (N, C_in, L) f32 -> (N, C_out, L) f32 (matches PyTorch ConvBlock.forward)."""
    N, C_in, L = x.shape
    C_out = w1.shape[0]
    pad = CONV_K // 2

    # --- im2col (layout plumbing outside the kernel; cost lands in the DMA) ---
    x_pad = jnp.pad(x, ((0, 0), (0, 0), (pad, pad)))                       # (N,C_in,L+2p)
    cols = jnp.stack([x_pad[:, :, k:k + L] for k in range(CONV_K)], axis=2)  # (N,C_in,K,L)
    x_col = cols.transpose(1, 2, 0, 3).reshape(C_in * CONV_K, N * L).astype(jnp.float32)
    w_mat = w1.reshape(C_out, C_in * CONV_K).astype(jnp.float32)
    # NOTE: on v6e/v7x production shapes cast x_col / w_mat to bfloat16 here
    # (keep preferred_element_type=f32 in the kernel) for ~2x MXU throughput.

    # b1 is intentionally not passed: under training-mode BatchNorm the
    # per-channel conv bias cancels exactly in (y - mu).
    del b1

    gamma_c = gamma.reshape(C_out, 1).astype(jnp.float32)
    beta_c = beta.reshape(C_out, 1).astype(jnp.float32)
    w2_flat = w2.reshape(2 * ATT_K).astype(jnp.float32)   # [avg taps | max taps]
    b2_flat = b2.reshape(1).astype(jnp.float32)

    vmem = pl.BlockSpec(memory_space=pltpu.MemorySpace.VMEM)
    smem = pl.BlockSpec(memory_space=pltpu.MemorySpace.SMEM)

    # Whole problem fits in VMEM -> single invocation, no grid. For production
    # shapes: add a grid over N (dimension_semantics=("parallel",)) with a
    # separate BN-stats reduction pass and vmem_limit_bytes sized for v7x's
    # 64 MiB VMEM.
    y2d = pl.pallas_call(
        functools.partial(conv_block_kernel, seq_len=L),
        out_shape=jax.ShapeDtypeStruct((C_out, N * L), jnp.float32),
        in_specs=[vmem, vmem, vmem, vmem, smem, smem],
        out_specs=vmem,
    )(w_mat, x_col, gamma_c, beta_c, w2_flat, b2_flat)

    # Lane-dense (C_out, N*L) slab -> (N, C_out, L): wrapper-side plumbing.
    return y2d.reshape(C_out, N, L).transpose(1, 0, 2)


def conv_block_ref(x, w1, b1, gamma, beta, w2, b2):
    """Pure-JAX reference (same math as the PyTorch module, training-mode BN)."""
    N, C_in, L = x.shape
    C_out = w1.shape[0]
    pad = CONV_K // 2
    x_pad = jnp.pad(x, ((0, 0), (0, 0), (pad, pad)))
    y = jnp.zeros((N, C_out, L), jnp.float32)
    for k in range(CONV_K):
        y = y + jnp.einsum('oi,nil->nol', w1[:, :, k], x_pad[:, :, k:k + L])
    y = y + b1.reshape(1, C_out, 1)
    mu = jnp.mean(y, axis=(0, 2), keepdims=True)
    var = jnp.mean((y - mu) ** 2, axis=(0, 2), keepdims=True)
    y = gamma.reshape(1, C_out, 1) * (y - mu) * jax.lax.rsqrt(var + BN_EPS) \
        + beta.reshape(1, C_out, 1)
    y = jnp.maximum(y, 0.0)
    comb = jnp.concatenate(
        [jnp.mean(y, axis=1, keepdims=True), jnp.max(y, axis=1, keepdims=True)], axis=1)
    apad = ATT_K // 2
    comb_pad = jnp.pad(comb, ((0, 0), (0, 0), (apad, apad)))
    att = jnp.zeros((N, 1, L), jnp.float32)
    for k in range(ATT_K):
        att = att + jnp.einsum('oi,nil->nol', w2[:, :, k], comb_pad[:, :, k:k + L])
    att = jax.nn.sigmoid(att + b2.reshape(1, 1, 1))
    return y * att


if __name__ == "__main__":
    N, C_IN, C_OUT, L = 2, 4, 8, 16

    key = jax.random.PRNGKey(0)
    kx, kw1, kb1, kw2, kb2 = jax.random.split(key, 5)

    x = jax.random.normal(kx, (N, C_IN, L), jnp.float32)
    # Deterministic synthetic parameters (shapes match nn.Conv1d / nn.BatchNorm1d).
    w1 = jax.random.normal(kw1, (C_OUT, C_IN, CONV_K), jnp.float32) * 0.2
    b1 = jax.random.normal(kb1, (C_OUT,), jnp.float32) * 0.1
    gamma = jnp.ones((C_OUT,), jnp.float32)   # BatchNorm1d weight init
    beta = jnp.zeros((C_OUT,), jnp.float32)   # BatchNorm1d bias init
    w2 = jax.random.normal(kw2, (1, 2, ATT_K), jnp.float32) * 0.2
    b2 = jax.random.normal(kb2, (1,), jnp.float32) * 0.1

    out = conv_block(x, w1, b1, gamma, beta, w2, b2)
    out = jax.block_until_ready(out)

    ref = conv_block_ref(x, w1, b1, gamma, beta, w2, b2)
    assert out.shape == (N, C_OUT, L)
    assert jnp.allclose(out, ref, atol=2e-3, rtol=2e-3), "mismatch vs JAX reference"

    print("KERNEL_OK")
</pallas_src>

<mosaic_0001>
module attributes {stable_mosaic.version = 11 : i64} {
  func.func @conv_block_kernel(%arg0: memref<8x20xf32, #tpu.memory_space<vmem>>, %arg1: memref<20x32xf32, #tpu.memory_space<vmem>>, %arg2: memref<8x1xf32, #tpu.memory_space<vmem>>, %arg3: memref<8x1xf32, #tpu.memory_space<vmem>>, %arg4: memref<14xf32, #tpu.memory_space<smem>>, %arg5: memref<1xf32, #tpu.memory_space<smem>>, %arg6: memref<8x32xf32, #tpu.memory_space<vmem>>) attributes {dimension_semantics = [], scalar_prefetch = 0 : i64, scratch_operands = 0 : i64, tpu.core_type = #tpu.core_type<tc>} {
    %c0 = arith.constant 0 : index
    %c0_0 = arith.constant 0 : index
    %0 = vector.load %arg0[%c0, %c0_0] : memref<8x20xf32, #tpu.memory_space<vmem>>, vector<8x20xf32>
    %c0_1 = arith.constant 0 : index
    %c0_2 = arith.constant 0 : index
    %1 = vector.load %arg1[%c0_1, %c0_2] : memref<20x32xf32, #tpu.memory_space<vmem>>, vector<20x32xf32>
    %cst = arith.constant dense<0.000000e+00> : vector<8x32xf32>
    %2 = tpu.matmul %0, %1, %cst {dimension_numbers = #tpu.dot_dimension_numbers<[1], [0], [0], [1], [0, 0, 1, 1], [], []>} : vector<8x20xf32>, vector<20x32xf32>, vector<8x32xf32> -> vector<8x32xf32>
    %cst_3 = arith.constant dense<0.000000e+00> : vector<8xf32>
    %3 = vector.multi_reduction <add>, %2, %cst_3 [1] : vector<8x32xf32> to vector<8xf32>
    %4 = vector.shape_cast %3 : vector<8xf32> to vector<8x1xf32>
    %cst_4 = arith.constant 3.200000e+01 : f32
    %5 = vector.broadcast %cst_4 : f32 to vector<8x1xf32>
    %6 = arith.divf %4, %5 : vector<8x1xf32>
    %7 = arith.mulf %2, %2 : vector<8x32xf32>
    %cst_5 = arith.constant dense<0.000000e+00> : vector<8xf32>
    %8 = vector.multi_reduction <add>, %7, %cst_5 [1] : vector<8x32xf32> to vector<8xf32>
    %9 = vector.shape_cast %8 : vector<8xf32> to vector<8x1xf32>
    %cst_6 = arith.constant 3.200000e+01 : f32
    %10 = vector.broadcast %cst_6 : f32 to vector<8x1xf32>
    %11 = arith.divf %9, %10 : vector<8x1xf32>
    %12 = arith.mulf %6, %6 : vector<8x1xf32>
    %13 = arith.subf %11, %12 : vector<8x1xf32>
    %c0_7 = arith.constant 0 : index
    %c0_8 = arith.constant 0 : index
    %14 = vector.load %arg2[%c0_7, %c0_8] : memref<8x1xf32, #tpu.memory_space<vmem>>, vector<8x1xf32>
    %cst_9 = arith.constant 9.99999974E-6 : f32
    %15 = vector.broadcast %cst_9 : f32 to vector<8x1xf32>
    %16 = arith.addf %13, %15 : vector<8x1xf32>
    %17 = math.rsqrt %16 : vector<8x1xf32>
    %18 = arith.mulf %14, %17 : vector<8x1xf32>
    %c0_10 = arith.constant 0 : index
    %c0_11 = arith.constant 0 : index
    %19 = vector.load %arg3[%c0_10, %c0_11] : memref<8x1xf32, #tpu.memory_space<vmem>>, vector<8x1xf32>
    %20 = arith.mulf %18, %6 : vector<8x1xf32>
    %21 = arith.subf %19, %20 : vector<8x1xf32>
    %22 = vector.broadcast %18 : vector<8x1xf32> to vector<8x32xf32>
    %23 = arith.mulf %2, %22 : vector<8x32xf32>
    %24 = vector.broadcast %21 : vector<8x1xf32> to vector<8x32xf32>
    %25 = arith.addf %23, %24 : vector<8x32xf32>
    %cst_12 = arith.constant 0.000000e+00 : f32
    %26 = vector.broadcast %cst_12 : f32 to vector<8x32xf32>
    %27 = arith.maximumf %25, %26 : vector<8x32xf32>
    %cst_13 = arith.constant dense<0.000000e+00> : vector<32xf32>
    %28 = vector.multi_reduction <add>, %27, %cst_13 [0] : vector<8x32xf32> to vector<32xf32>
    %29 = vector.shape_cast %28 : vector<32xf32> to vector<1x32xf32>
    %cst_14 = arith.constant 1.250000e-01 : f32
    %30 = vector.broadcast %cst_14 : f32 to vector<1x32xf32>
    %31 = arith.mulf %29, %30 : vector<1x32xf32>
    %cst_15 = arith.constant dense<0xFF800000> : vector<32xf32>
    %32 = vector.multi_reduction <maximumf>, %27, %cst_15 [0] : vector<8x32xf32> to vector<32xf32>
    %33 = vector.shape_cast %32 : vector<32xf32> to vector<1x32xf32>
    %cst_16 = arith.constant 0.000000e+00 : f32
    %34 = vector.broadcast %cst_16 : f32 to vector<1x3xf32>
    %35 = tpu.concatenate %34, %31, %34 in 1 : vector<1x3xf32>, vector<1x32xf32>, vector<1x3xf32> -> vector<1x38xf32>
    %36 = tpu.concatenate %34, %33, %34 in 1 : vector<1x3xf32>, vector<1x32xf32>, vector<1x3xf32> -> vector<1x38xf32>
    %37 = tpu.iota {dimensions = array<i32: 1>} : vector<1x32xi32>
    %c16_i32 = arith.constant 16 : i32
    %c0_i32 = arith.constant 0 : i32
    %38 = arith.cmpi eq, %c16_i32, %c0_i32 : i32
    %c1_i32 = arith.constant 1 : i32
    %39 = arith.select %38, %c1_i32, %c16_i32 : i32
    %40 = vector.broadcast %39 : i32 to vector<1x32xi32>
    %41 = arith.remsi %37, %40 : vector<1x32xi32>
    %c0_i32_17 = arith.constant 0 : i32
    %42 = vector.broadcast %c0_i32_17 : i32 to vector<1x32xi32>
    %43 = arith.cmpi ne, %41, %42 : vector<1x32xi32>
    %c0_i32_18 = arith.constant 0 : i32
    %44 = vector.broadcast %c0_i32_18 : i32 to vector<1x32xi32>
    %45 = arith.cmpi slt, %41, %44 : vector<1x32xi32>
    %c0_i32_19 = arith.constant 0 : i32
    %46 = arith.cmpi slt, %39, %c0_i32_19 : i32
    %47 = vector.broadcast %46 : i1 to vector<1x32xi1>
    %48 = vector.broadcast %47 : vector<1x32xi1> to vector<1x32xi1>
    %49 = arith.xori %45, %48 : vector<1x32xi1>
    %50 = arith.andi %49, %43 : vector<1x32xi1>
    %51 = vector.broadcast %39 : i32 to vector<1x32xi32>
    %52 = arith.addi %41, %51 : vector<1x32xi32>
    %53 = arith.select %50, %52, %41 : vector<1x32xi1>, vector<1x32xi32>
    %c0_20 = arith.constant 0 : index
    %54 = memref.load %arg5[%c0_20] : memref<1xf32, #tpu.memory_space<smem>>
    %55 = vector.broadcast %54 : f32 to vector<1x32xf32>
    %c0_21 = arith.constant 0 : index
    %56 = memref.load %arg4[%c0_21] : memref<14xf32, #tpu.memory_space<smem>>
    %57 = vector.extract_strided_slice %35 {offsets = [0, 0], sizes = [1, 32], strides = [1, 1]} : vector<1x38xf32> to vector<1x32xf32>
    %58 = vector.broadcast %56 : f32 to vector<1x32xf32>
    %59 = arith.mulf %58, %57 : vector<1x32xf32>
    %c7 = arith.constant 7 : index
    %60 = memref.load %arg4[%c7] : memref<14xf32, #tpu.memory_space<smem>>
    %61 = vector.extract_strided_slice %36 {offsets = [0, 0], sizes = [1, 32], strides = [1, 1]} : vector<1x38xf32> to vector<1x32xf32>
    %62 = vector.broadcast %60 : f32 to vector<1x32xf32>
    %63 = arith.mulf %62, %61 : vector<1x32xf32>
    %64 = arith.addf %59, %63 : vector<1x32xf32>
    %c-3_i32 = arith.constant -3 : i32
    %65 = vector.broadcast %c-3_i32 : i32 to vector<1x32xi32>
    %66 = arith.addi %53, %65 : vector<1x32xi32>
    %c0_i32_22 = arith.constant 0 : i32
    %67 = vector.broadcast %c0_i32_22 : i32 to vector<1x32xi32>
    %68 = arith.cmpi sge, %66, %67 : vector<1x32xi32>
    %c-3_i32_23 = arith.constant -3 : i32
    %69 = vector.broadcast %c-3_i32_23 : i32 to vector<1x32xi32>
    %70 = arith.addi %53, %69 : vector<1x32xi32>
    %c16_i32_24 = arith.constant 16 : i32
    %71 = vector.broadcast %c16_i32_24 : i32 to vector<1x32xi32>
    %72 = arith.cmpi slt, %70, %71 : vector<1x32xi32>
    %73 = arith.andi %68, %72 : vector<1x32xi1>
    %cst_25 = arith.constant 0.000000e+00 : f32
    %74 = vector.broadcast %cst_25 : f32 to vector<1x32xf32>
    %75 = arith.select %73, %64, %74 : vector<1x32xi1>, vector<1x32xf32>
    %76 = arith.addf %55, %75 : vector<1x32xf32>
    %c1 = arith.constant 1 : index
    %77 = memref.load %arg4[%c1] : memref<14xf32, #tpu.memory_space<smem>>
    %78 = vector.extract_strided_slice %35 {offsets = [0, 1], sizes = [1, 32], strides = [1, 1]} : vector<1x38xf32> to vector<1x32xf32>
    %79 = vector.broadcast %77 : f32 to vector<1x32xf32>
    %80 = arith.mulf %79, %78 : vector<1x32xf32>
    %c8 = arith.constant 8 : index
    %81 = memref.load %arg4[%c8] : memref<14xf32, #tpu.memory_space<smem>>
    %82 = vector.extract_strided_slice %36 {offsets = [0, 1], sizes = [1, 32], strides = [1, 1]} : vector<1x38xf32> to vector<1x32xf32>
    %83 = vector.broadcast %81 : f32 to vector<1x32xf32>
    %84 = arith.mulf %83, %82 : vector<1x32xf32>
    %85 = arith.addf %80, %84 : vector<1x32xf32>
    %c-2_i32 = arith.constant -2 : i32
    %86 = vector.broadcast %c-2_i32 : i32 to vector<1x32xi32>
    %87 = arith.addi %53, %86 : vector<1x32xi32>
    %c0_i32_26 = arith.constant 0 : i32
    %88 = vector.broadcast %c0_i32_26 : i32 to vector<1x32xi32>
    %89 = arith.cmpi sge, %87, %88 : vector<1x32xi32>
    %c-2_i32_27 = arith.constant -2 : i32
    %90 = vector.broadcast %c-2_i32_27 : i32 to vector<1x32xi32>
    %91 = arith.addi %53, %90 : vector<1x32xi32>
    %c16_i32_28 = arith.constant 16 : i32
    %92 = vector.broadcast %c16_i32_28 : i32 to vector<1x32xi32>
    %93 = arith.cmpi slt, %91, %92 : vector<1x32xi32>
    %94 = arith.andi %89, %93 : vector<1x32xi1>
    %cst_29 = arith.constant 0.000000e+00 : f32
    %95 = vector.broadcast %cst_29 : f32 to vector<1x32xf32>
    %96 = arith.select %94, %85, %95 : vector<1x32xi1>, vector<1x32xf32>
    %97 = arith.addf %76, %96 : vector<1x32xf32>
    %c2 = arith.constant 2 : index
    %98 = memref.load %arg4[%c2] : memref<14xf32, #tpu.memory_space<smem>>
    %99 = vector.extract_strided_slice %35 {offsets = [0, 2], sizes = [1, 32], strides = [1, 1]} : vector<1x38xf32> to vector<1x32xf32>
    %100 = vector.broadcast %98 : f32 to vector<1x32xf32>
    %101 = arith.mulf %100, %99 : vector<1x32xf32>
    %c9 = arith.constant 9 : index
    %102 = memref.load %arg4[%c9] : memref<14xf32, #tpu.memory_space<smem>>
    %103 = vector.extract_strided_slice %36 {offsets = [0, 2], sizes = [1, 32], strides = [1, 1]} : vector<1x38xf32> to vector<1x32xf32>
    %104 = vector.broadcast %102 : f32 to vector<1x32xf32>
    %105 = arith.mulf %104, %103 : vector<1x32xf32>
    %106 = arith.addf %101, %105 : vector<1x32xf32>
    %c-1_i32 = arith.constant -1 : i32
    %107 = vector.broadcast %c-1_i32 : i32 to vector<1x32xi32>
    %108 = arith.addi %53, %107 : vector<1x32xi32>
    %c0_i32_30 = arith.constant 0 : i32
    %109 = vector.broadcast %c0_i32_30 : i32 to vector<1x32xi32>
    %110 = arith.cmpi sge, %108, %109 : vector<1x32xi32>
    %c-1_i32_31 = arith.constant -1 : i32
    %111 = vector.broadcast %c-1_i32_31 : i32 to vector<1x32xi32>
    %112 = arith.addi %53, %111 : vector<1x32xi32>
    %c16_i32_32 = arith.constant 16 : i32
    %113 = vector.broadcast %c16_i32_32 : i32 to vector<1x32xi32>
    %114 = arith.cmpi slt, %112, %113 : vector<1x32xi32>
    %115 = arith.andi %110, %114 : vector<1x32xi1>
    %cst_33 = arith.constant 0.000000e+00 : f32
    %116 = vector.broadcast %cst_33 : f32 to vector<1x32xf32>
    %117 = arith.select %115, %106, %116 : vector<1x32xi1>, vector<1x32xf32>
    %118 = arith.addf %97, %117 : vector<1x32xf32>
    %c3 = arith.constant 3 : index
    %119 = memref.load %arg4[%c3] : memref<14xf32, #tpu.memory_space<smem>>
    %120 = vector.extract_strided_slice %35 {offsets = [0, 3], sizes = [1, 32], strides = [1, 1]} : vector<1x38xf32> to vector<1x32xf32>
    %121 = vector.broadcast %119 : f32 to vector<1x32xf32>
    %122 = arith.mulf %121, %120 : vector<1x32xf32>
    %c10 = arith.constant 10 : index
    %123 = memref.load %arg4[%c10] : memref<14xf32, #tpu.memory_space<smem>>
    %124 = vector.extract_strided_slice %36 {offsets = [0, 3], sizes = [1, 32], strides = [1, 1]} : vector<1x38xf32> to vector<1x32xf32>
    %125 = vector.broadcast %123 : f32 to vector<1x32xf32>
    %126 = arith.mulf %125, %124 : vector<1x32xf32>
    %127 = arith.addf %122, %126 : vector<1x32xf32>
    %128 = arith.addf %118, %127 : vector<1x32xf32>
    %c4 = arith.constant 4 : index
    %129 = memref.load %arg4[%c4] : memref<14xf32, #tpu.memory_space<smem>>
    %130 = vector.extract_strided_slice %35 {offsets = [0, 4], sizes = [1, 32], strides = [1, 1]} : vector<1x38xf32> to vector<1x32xf32>
    %131 = vector.broadcast %129 : f32 to vector<1x32xf32>
    %132 = arith.mulf %131, %130 : vector<1x32xf32>
    %c11 = arith.constant 11 : index
    %133 = memref.load %arg4[%c11] : memref<14xf32, #tpu.memory_space<smem>>
    %134 = vector.extract_strided_slice %36 {offsets = [0, 4], sizes = [1, 32], strides = [1, 1]} : vector<1x38xf32> to vector<1x32xf32>
    %135 = vector.broadcast %133 : f32 to vector<1x32xf32>
    %136 = arith.mulf %135, %134 : vector<1x32xf32>
    %137 = arith.addf %132, %136 : vector<1x32xf32>
    %c1_i32_34 = arith.constant 1 : i32
    %138 = vector.broadcast %c1_i32_34 : i32 to vector<1x32xi32>
    %139 = arith.addi %53, %138 : vector<1x32xi32>
    %c0_i32_35 = arith.constant 0 : i32
    %140 = vector.broadcast %c0_i32_35 : i32 to vector<1x32xi32>
    %141 = arith.cmpi sge, %139, %140 : vector<1x32xi32>
    %c1_i32_36 = arith.constant 1 : i32
    %142 = vector.broadcast %c1_i32_36 : i32 to vector<1x32xi32>
    %143 = arith.addi %53, %142 : vector<1x32xi32>
    %c16_i32_37 = arith.constant 16 : i32
    %144 = vector.broadcast %c16_i32_37 : i32 to vector<1x32xi32>
    %145 = arith.cmpi slt, %143, %144 : vector<1x32xi32>
    %146 = arith.andi %141, %145 : vector<1x32xi1>
    %cst_38 = arith.constant 0.000000e+00 : f32
    %147 = vector.broadcast %cst_38 : f32 to vector<1x32xf32>
    %148 = arith.select %146, %137, %147 : vector<1x32xi1>, vector<1x32xf32>
    %149 = arith.addf %128, %148 : vector<1x32xf32>
    %c5 = arith.constant 5 : index
    %150 = memref.load %arg4[%c5] : memref<14xf32, #tpu.memory_space<smem>>
    %151 = vector.extract_strided_slice %35 {offsets = [0, 5], sizes = [1, 32], strides = [1, 1]} : vector<1x38xf32> to vector<1x32xf32>
    %152 = vector.broadcast %150 : f32 to vector<1x32xf32>
    %153 = arith.mulf %152, %151 : vector<1x32xf32>
    %c12 = arith.constant 12 : index
    %154 = memref.load %arg4[%c12] : memref<14xf32, #tpu.memory_space<smem>>
    %155 = vector.extract_strided_slice %36 {offsets = [0, 5], sizes = [1, 32], strides = [1, 1]} : vector<1x38xf32> to vector<1x32xf32>
    %156 = vector.broadcast %154 : f32 to vector<1x32xf32>
    %157 = arith.mulf %156, %155 : vector<1x32xf32>
    %158 = arith.addf %153, %157 : vector<1x32xf32>
    %c2_i32 = arith.constant 2 : i32
    %159 = vector.broadcast %c2_i32 : i32 to vector<1x32xi32>
    %160 = arith.addi %53, %159 : vector<1x32xi32>
    %c0_i32_39 = arith.constant 0 : i32
    %161 = vector.broadcast %c0_i32_39 : i32 to vector<1x32xi32>
    %162 = arith.cmpi sge, %160, %161 : vector<1x32xi32>
    %c2_i32_40 = arith.constant 2 : i32
    %163 = vector.broadcast %c2_i32_40 : i32 to vector<1x32xi32>
    %164 = arith.addi %53, %163 : vector<1x32xi32>
    %c16_i32_41 = arith.constant 16 : i32
    %165 = vector.broadcast %c16_i32_41 : i32 to vector<1x32xi32>
    %166 = arith.cmpi slt, %164, %165 : vector<1x32xi32>
    %167 = arith.andi %162, %166 : vector<1x32xi1>
    %cst_42 = arith.constant 0.000000e+00 : f32
    %168 = vector.broadcast %cst_42 : f32 to vector<1x32xf32>
    %169 = arith.select %167, %158, %168 : vector<1x32xi1>, vector<1x32xf32>
    %170 = arith.addf %149, %169 : vector<1x32xf32>
    %c6 = arith.constant 6 : index
    %171 = memref.load %arg4[%c6] : memref<14xf32, #tpu.memory_space<smem>>
    %172 = vector.extract_strided_slice %35 {offsets = [0, 6], sizes = [1, 32], strides = [1, 1]} : vector<1x38xf32> to vector<1x32xf32>
    %173 = vector.broadcast %171 : f32 to vector<1x32xf32>
    %174 = arith.mulf %173, %172 : vector<1x32xf32>
    %c13 = arith.constant 13 : index
    %175 = memref.load %arg4[%c13] : memref<14xf32, #tpu.memory_space<smem>>
    %176 = vector.extract_strided_slice %36 {offsets = [0, 6], sizes = [1, 32], strides = [1, 1]} : vector<1x38xf32> to vector<1x32xf32>
    %177 = vector.broadcast %175 : f32 to vector<1x32xf32>
    %178 = arith.mulf %177, %176 : vector<1x32xf32>
    %179 = arith.addf %174, %178 : vector<1x32xf32>
    %c3_i32 = arith.constant 3 : i32
    %180 = vector.broadcast %c3_i32 : i32 to vector<1x32xi32>
    %181 = arith.addi %53, %180 : vector<1x32xi32>
    %c0_i32_43 = arith.constant 0 : i32
    %182 = vector.broadcast %c0_i32_43 : i32 to vector<1x32xi32>
    %183 = arith.cmpi sge, %181, %182 : vector<1x32xi32>
    %c3_i32_44 = arith.constant 3 : i32
    %184 = vector.broadcast %c3_i32_44 : i32 to vector<1x32xi32>
    %185 = arith.addi %53, %184 : vector<1x32xi32>
    %c16_i32_45 = arith.constant 16 : i32
    %186 = vector.broadcast %c16_i32_45 : i32 to vector<1x32xi32>
    %187 = arith.cmpi slt, %185, %186 : vector<1x32xi32>
    %188 = arith.andi %183, %187 : vector<1x32xi1>
    %cst_46 = arith.constant 0.000000e+00 : f32
    %189 = vector.broadcast %cst_46 : f32 to vector<1x32xf32>
    %190 = arith.select %188, %179, %189 : vector<1x32xi1>, vector<1x32xf32>
    %191 = arith.addf %170, %190 : vector<1x32xf32>
    %192 = arith.negf %191 : vector<1x32xf32>
    %193 = math.exp %192 : vector<1x32xf32>
    %cst_47 = arith.constant 1.000000e+00 : f32
    %194 = vector.broadcast %cst_47 : f32 to vector<1x32xf32>
    %195 = arith.addf %194, %193 : vector<1x32xf32>
    %196 = arith.divf %194, %195 : vector<1x32xf32>
    %197 = vector.broadcast %196 : vector<1x32xf32> to vector<8x32xf32>
    %198 = arith.mulf %27, %197 : vector<8x32xf32>
    %c0_48 = arith.constant 0 : index
    %c0_49 = arith.constant 0 : index
    %199 = vector.load %arg6[%c0_48, %c0_49] : memref<8x32xf32, #tpu.memory_space<vmem>>, vector<8x32xf32>
    tpu.vector_store %arg6[%c0_48, %c0_49], %198 {strides = array<i32>} : memref<8x32xf32, #tpu.memory_space<vmem>>, vector<8x32xf32>,
    return
  }
}

</mosaic_0001>

<bundles_post_ra>
// kernel: tpu_custom_call.1
= control target key start
LH: loop header
LB: loop body
LE: loop exit
PB: predicated region body
PF: predicated region fallthrough
CT: control target
= control target key end

     0   :  { %12 = vsyncpa [#allocation4], 0  ;;  %s550_s0 = inlined_call_operand.vmem [shape: f32[8,20], index: 0, kind: input, shape index: {}]   ;;  %s551_s1 = inlined_call_operand.hbm [shape: f32[20,32], index: 1, kind: input, shape index: {}]   ;;  %s552_s2 = inlined_call_operand.vmem [shape: f32[8,1], index: 2, kind: input, shape index: {}]   ;;  %s553_s3 = inlined_call_operand.vmem [shape: f32[8,1], index: 3, kind: input, shape index: {}]   ;;  %s554_s4 = inlined_call_operand.vmem [shape: f32[14], index: 4, kind: input, shape index: {}]   ;;  %s555_s5 = inlined_call_operand.<no memory space> [shape: f32[1], index: 5, kind: input, shape index: {}]   ;;  %s556_s6 = inlined_call_operand.hbm [shape: f32[8,32], index: 6, kind: output, shape index: {}]  }
   0x1   :  { %13 = vsyncpa [#allocation6], 0 }
   0x2   :  { %14 = vsyncpa [#allocation5], 0  ;;  %s460_s21 = smov [#allocation3]   ;;  %s39_s25 = sshll.u32 %s554_s4, 4  ;;  %s40_s25 = int_to_ptr.vmem [resolvable:$true] %s39_s25 }
   0x3   :  { %s22_s22 = sshll.u32 %s460_s21, 4  ;;  %s23_s22 = int_to_ptr.vmem [resolvable:$true] %s22_s22 }
   0x4   :  { %s410_s26 = scalar_lea.vmem %s23_s22, 384  ;;  %p415_p1 = scmp.lt.s32.totalorder %s23_s22, %s23_s22 }
   0x5   :  { %p411_p0 = scmp.ne.s32.totalorder %s23_s22, %s410_s26  ;;  %p416_p2 = scmp.lt.s32.totalorder %s410_s26, %s410_s26 }
   0x7   :  { %p417_p3 = por %p416_p2, %p415_p1 }
   0x9   :  { %p418_p4 = pnand %p417_p3, %p411_p0 }
   0xb   :  { %421 = shalt.err (!%p418_p4)
}
   0xc   :  { %s461_s27 = smov 128   ;;  %s462_s28 = smov 8  }
   0xd   :  { %28 = dma.hbm_to_vmem [thread:$0]  %s551_s1, 384, %s23_s22, [#allocation4], %s461_s27, %s461_s27, %s462_s28  }
   0xe   :  { %s422_s7 = scalar_lea.vmem %s40_s25, 16  ;;  %p427_p6 = scmp.lt.s32.totalorder %s40_s25, %s40_s25 }
   0xf   :  { %p423_p5 = scmp.ne.s32.totalorder %s40_s25, %s422_s7  ;;  %p428_p7 = scmp.lt.s32.totalorder %s422_s7, %s422_s7 }
  0x11   :  { %p429_p8 = por %p428_p7, %p427_p6 }
  0x13   :  { %p430_p9 = pnand %p429_p8, %p423_p5 }
  0x15   :  { %433 = shalt.err (!%p430_p9)
}
  0x16   :  { %s463_s4 = smov [#allocation7]  }
  0x17   :  { %42 = dma.vmem_to_smem %s40_s25, 16, %s463_s4, [#allocation6]  }
  0x18   :  { %454 = dma.done.wait [#allocation4], 384  }
  0x19   :  { %455 = vsyncadd [#allocation4], 4294966912 }
  0x1a   :  { %456 = dma.done.wait [#allocation6], 16  }
  0x1b   :  { %457 = vsyncadd [#allocation6], 4294967280 }
  0x1c   :  { %51 = sfence }
  0x1d   :  { %v55_v0 = vld [vmem:[#allocation3 + $0x10] sm:$0xf]  ;;  %vm60_vm0 = vcmask 1043456   ;;  %v464_v1 = vmov 0.0   ;;  %v54_v2 = vld [vmem:[#allocation3 + $0x8] sm:$0xff]  ;;  %vm465_vm1 = vmmov 0  }
  0x1e   :  { %370 = vmatprep.subr.mxu0 %v464_v1  ;;  %376 = vmatprep.mubr.msk.f32.mxu0 %vm465_vm1, %v464_v1  ;;  %v53_v3 = vld [vmem:[#allocation3] sm:$0xff]  ;;  %vm56_vm2 = vcmask 162816   ;;  %vm134_vm3 = vcmask 261120   ;;  %v466_v10 = vmov 0   ;;  %s354_s12 = sld [smem:[#allocation7 + $0x8]]  ;;  %vm186_vm4 = vcmask 23552  }
  0x1f   :  { %371 = vmatpush3.msk.msra.mxu0 %vm60_vm0, %v55_v0  ;;  %v52_v4 = vld [vmem:[%s550_s0] sm:$0xff]  ;;  %394 = vset.pattern.permute.xlu1 %v466_v10  ;;  %s363_s13 = sld [smem:[#allocation7 + $0x6]]  ;;  %vm188_vm5 = vcmask 285696   ;;  %s468_s24 = smov 122  }
  0x20   :  { %372 = vmatprep.subr.mxu0 %v464_v1  ;;  %395 = vset.pattern.permute.xlu0 %v466_v10  ;;  %v147_v18 = vld [vmem:[%s552_s2] sm:$0xff]  ;;  %s467_s2 = smov 3   ;;  %s353_s14 = sld [smem:[#allocation7 + $0x1]] }
  0x21   :  { %373 = vmatpush3.msra.mxu0 %v54_v2  ;;  %v151_v21 = vld [vmem:[%s553_s3] sm:$0xff]  ;;  %s364_s3 = sld [smem:[#allocation7 + $0xd]]  ;;  %s469_s25 = smov 127  }
  0x22   :  { %374 = vmatprep.subr.mxu0 %v464_v1  ;;  %s212_s15 = sld [smem:[#allocation7]]  ;;  %s470_s27 = smov 126  }
  0x23   :  { %375 = vmatpush3.msra.mxu0 %v53_v3  ;;  %s352_s16 = sld [smem:[#allocation7 + $0x7]]  ;;  %s471_s28 = smov 125  }
  0x24   :  { %377 = vmatmul.mubr.msk.f32.vlgmr.msra.gmra.mxu0 %vm56_vm2, %v52_v4  ;;  %s355_s17 = sld [smem:[#allocation7 + $0x2]]  ;;  %v229_v51 = vstv %s354_s12  ;;  %s472_s29 = smov 124  }
  0x25   :  { %s533_s18 = sld [smem:[#allocation7 + $0x9]]  ;;  %v306_v49 = vstv %s363_s13  ;;  %s473_s30 = smov 123  }
  0x26   :  { %s535_s19 = sld [smem:[#allocation7 + $0x3]]  ;;  %v226_v50 = vstv %s353_s14 }
  0x27   :  { %v309_v46 = vstv %s364_s3  ;;  %s537_s20 = sld [smem:[#allocation7 + $0xa]] }
  0x28   :  { %v213_v53 = vstv %s212_s15  ;;  %s359_s21 = sld [smem:[#allocation7 + $0x4]] }
  0x29   :  { %v216_v54 = vstv %s352_s16  ;;  %s360_s22 = sld [smem:[#allocation7 + $0xb]] }
  0x2a   :  { %v243_v56 = vstv %s355_s17  ;;  %s361_s23 = sld [smem:[#allocation7 + $0x5]] }
  0x2b   :  { %v246_v61 = vstv %s533_s18  ;;  %s362_s26 = sld [smem:[#allocation7 + $0xc]] }
  0x2c   :  { %v260_v3 = vstv %s535_s19 }
  0xe4   :  { %v130_v5 = vpop.f32.mrf.mxu0 }
  0xe5   :  { %v135_v6 = vsel %vm134_vm3, %v130_v5, 0.0  ;;  %v140_v7 = vmul.f32 %v130_v5, %v130_v5 }
  0xe6   :  { %136 = vadd.xlane.f32.xlu0 %v135_v6  ;;  %v378_v8 = vpop.f32.mrf.mxu0  ;;  %v263_v6 = vstv %s537_s20 }
  0xe7   :  { %v141_v9 = vsel %vm134_vm3, %v140_v7, 0.0 }
  0xea   :  { %142 = vadd.xlane.f32.xlu0 %v141_v9  ;;  %v272_v9 = vstv %s359_s21 }
 0x16f   :  { %v137_v11 = vpop.xlane.xlu0 %136 }
 0x170   :  { %v139_v12 = vmul.f32 0.03125, %v137_v11  ;;  %v275_v11 = vstv %s360_s22 }
 0x172   :  { %v145_v14 = vmul.f32 %v139_v12, %v139_v12 }
 0x173   :  { %v143_v13 = vpop.xlane.xlu0 %142 }
 0x174   :  { %v144_v15 = vmul.f32 0.03125, %v143_v13 }
 0x176   :  { %v146_v16 = vsub.f32 %v144_v15, %v145_v14  ;;  %v289_v14 = vstv %s361_s23 }
 0x178   :  { %v148_v17 = vadd.f32 1e-05, %v146_v16  ;;  %v292_v16 = vstv %s362_s26 }
 0x17a   :  { %396 = vrsqrt.f32 %v148_v17 }
 0x187   :  { %v397_v19 = vpop.eup %396 }
 0x188   :  { %v150_v20 = vmul.f32 %v397_v19, %v147_v18 }
 0x18a   :  { %156 = vperm.xlu1 %394, %v150_v20   ;;  %v152_v22 = vmul.f32 %v150_v20, %v139_v12 }
 0x18c   :  { %v153_v23 = vsub.f32 %v151_v21, %v152_v22  ;;  %v196_v21 = vlaneseq }
 0x18e   :  { %162 = vperm.xlu1 %394, %v153_v23   ;;  %v197_v22 = vand.u32 127, %v196_v21 }
 0x190   :  { %v202_v23 = vand.u32 15, %v197_v22 }
 0x205   :  { %v157_v24 = vpop.permute.xlu1 %156 }
 0x206   :  { %v159_v25 = vmul.f32 %v157_v24, %v130_v5  ;;  %v219_v24 = vadd.s32 4294967293, %v202_v23 }
 0x208   :  { %vm220_vm6 = vcmp.ge.s32.totalorder %v219_v24, 0 }
 0x209   :  { %v163_v26 = vpop.permute.xlu1 %162 }
 0x20a   :  { %v165_v27 = vadd.f32 %v163_v26, %v159_v25  ;;  %v232_v25 = vadd.s32 4294967294, %v202_v23 }
 0x20c   :  { %v527_v28 = vmax.f32 %v165_v27, 0.0  ;;  %v249_v27 = vadd.s32 4294967295, %v202_v23  ;;  %vm233_vm7 = vcmp.ge.s32.totalorder %v232_v25, 0 }
 0x20e   :  { %v167_v29 = vsel %vm134_vm3, %v527_v28, 0.0  ;;  %v175_v30 = vsel %vm134_vm3, %v527_v28, -inf  ;;  %vm250_vm8 = vcmp.ge.s32.totalorder %v249_v27, 0 }
 0x20f   :  { %v168_v31 = vrot.slane %v167_v29, 4  ;;  %v176_v32 = vrot.slane %v175_v30, 4 }
 0x211   :  { %v169_v33 = vadd.f32 %v168_v31, %v167_v29  ;;  %v177_v34 = vmax.f32 %v175_v30, %v176_v32  ;;  %v211_v29 = vstv %s555_s5  ;;  %s474_s5 = smov [#allocation8]  }
 0x212   :  { %s340_s1 = sshll.u32 %s474_s5, 4  ;;  %s341_s1 = int_to_ptr.vmem [resolvable:$true] %s340_s1 }
 0x213   :  { %v178_v35 = vrot.slane %v177_v34, 2  ;;  %v170_v36 = vrot.slane %v169_v33, 2  ;;  %s434_s8 = scalar_lea.vmem %s341_s1, 128  ;;  %p439_p11 = scmp.lt.s32.totalorder %s341_s1, %s341_s1 }
 0x214   :  { %p435_p10 = scmp.ne.s32.totalorder %s341_s1, %s434_s8  ;;  %p440_p12 = scmp.lt.s32.totalorder %s434_s8, %s434_s8 }
 0x215   :  { %v179_v37 = vmax.f32 %v177_v34, %v178_v35  ;;  %v171_v38 = vadd.f32 %v170_v36, %v169_v33  ;;  %v278_v34 = vadd.s32 1, %v202_v23 }
 0x216   :  { %p441_p13 = por %p440_p12, %p439_p11 }
 0x217   :  { %v180_v39 = vrot.slane %v179_v37, 1  ;;  %v172_v40 = vrot.slane %v171_v38, 1  ;;  %vm280_vm9 = vcmp.lt.s32.totalorder %v278_v34, 16 }
 0x218   :  { %p442_p0 = pnand %p441_p13, %p435_p10 }
 0x219   :  { %v181_v41 = vmax.f32 %v179_v37, %v180_v39  ;;  %v173_v42 = vadd.f32 %v172_v40, %v171_v38  ;;  %v295_v39 = vadd.s32 2, %v202_v23  ;;  %v312_v40 = vadd.s32 3, %v202_v23 }
 0x21b   :  { %191 = vrot.lane.b32.xlu1 %v181_v41, %s467_s2  ;;  %v174_v43 = vmul.f32 0.125, %v173_v42  ;;  %vm297_vm10 = vcmp.lt.s32.totalorder %v295_v39, 16  ;;  %vm314_vm11 = vcmp.lt.s32.totalorder %v312_v40, 16 }
 0x21d   :  { %183 = vrot.lane.b32.xlu0 %v174_v43, %s467_s2 }
 0x28d   :  { %v192_v44 = vpop.permute.xlu1 %191 }
 0x28e   :  { %v194_v45 = vsel %vm186_vm4, 0.0, %v192_v44 }
 0x28f   :  { %v195_v47 = vsel %vm188_vm5, %v194_v45, 0.0  ;;  %v184_v48 = vpop.permute.xlu0 %183 }
 0x290   :  { %v187_v52 = vsel %vm186_vm4, 0.0, %v184_v48  ;;  %v310_v58 = vmul.f32 %v309_v46, %v195_v47  ;;  %v230_v60 = vmul.f32 %v229_v51, %v195_v47  ;;  %v217_v62 = vmul.f32 %v216_v54, %v195_v47 }
 0x291   :  { %v189_v55 = vsel %vm188_vm5, %v187_v52, 0.0  ;;  %v247_v5 = vmul.f32 %v246_v61, %v195_v47  ;;  %v264_v10 = vmul.f32 %v263_v6, %v195_v47  ;;  %v276_v15 = vmul.f32 %v275_v11, %v195_v47 }
 0x292   :  { %v307_v57 = vmul.f32 %v306_v49, %v189_v55  ;;  %v227_v59 = vmul.f32 %v226_v50, %v189_v55  ;;  %v214_v63 = vmul.f32 %v213_v53, %v189_v55  ;;  %v244_v2 = vmul.f32 %v243_v56, %v189_v55 }
 0x293   :  { %v261_v8 = vmul.f32 %v260_v3, %v189_v55  ;;  %v273_v13 = vmul.f32 %v272_v9, %v189_v55  ;;  %v290_v18 = vmul.f32 %v289_v14, %v189_v55  ;;  %v293_v19 = vmul.f32 %v292_v16, %v195_v47 }
 0x294   :  { %v311_v0 = vadd.f32 %v310_v58, %v307_v57  ;;  %v231_v1 = vadd.f32 %v230_v60, %v227_v59  ;;  %v218_v4 = vadd.f32 %v217_v62, %v214_v63  ;;  %v248_v7 = vadd.f32 %v247_v5, %v244_v2 }
 0x295   :  { %v265_v12 = vadd.f32 %v264_v10, %v261_v8  ;;  %v277_v17 = vadd.f32 %v276_v15, %v273_v13  ;;  %v294_v20 = vadd.f32 %v293_v19, %v290_v18  ;;  %v329_v54 = vshrl.u32 %v196_v21, 7 }
 0x296   :  { %317 = vrot.lane.b32.xlu0 %v311_v0, %s468_s24  ;;  %237 = vrot.lane.b32.xlu1 %v231_v1, %s469_s25  ;;  %v223_v30 = vsel %vm220_vm6, %v218_v4, 0.0 }
 0x297   :  { %v224_v33 = vadd.f32 %v223_v30, %v211_v29  ;;  %v330_v55 = vsub.s32 0, %v329_v54 }
 0x29a   :  { %254 = vrot.lane.b32.xlu1 %v248_v7, %s470_s27 }
 0x29e   :  { %267 = vrot.lane.b32.xlu1 %v265_v12, %s471_s28 }
 0x2a2   :  { %283 = vrot.lane.b32.xlu1 %v277_v17, %s472_s29 }
 0x2a6   :  { %300 = vrot.lane.b32.xlu1 %v294_v20, %s473_s30 }
 0x308   :  { %v238_v26 = vpop.permute.xlu1 %237  ;;  %v318_v44 = vpop.permute.xlu0 %317 }
 0x309   :  { %v240_v32 = vsel %vm233_vm7, %v238_v26, 0.0  ;;  %v320_v49 = vsel %vm314_vm11, %v318_v44, 0.0 }
 0x30a   :  { %v241_v36 = vadd.f32 %v240_v32, %v224_v33 }
 0x30c   :  { %v255_v31 = vpop.permute.xlu1 %254 }
 0x30d   :  { %v257_v35 = vsel %vm250_vm8, %v255_v31, 0.0 }
 0x30e   :  { %v258_v38 = vadd.f32 %v257_v35, %v241_v36 }
 0x310   :  { %v268_v37 = vpop.permute.xlu1 %267 }
 0x311   :  { %v270_v43 = vadd.f32 %v268_v37, %v258_v38 }
 0x314   :  { %v284_v41 = vpop.permute.xlu1 %283 }
 0x315   :  { %v286_v42 = vsel %vm280_vm9, %v284_v41, 0.0 }
 0x316   :  { %v287_v45 = vadd.f32 %v286_v42, %v270_v43 }
 0x318   :  { %v301_v46 = vpop.permute.xlu1 %300 }
 0x319   :  { %v303_v47 = vsel %vm297_vm10, %v301_v46, 0.0 }
 0x31a   :  { %v304_v48 = vadd.f32 %v303_v47, %v287_v45 }
 0x31c   :  { %v321_v50 = vadd.f32 %v320_v49, %v304_v48 }
 0x31e   :  { %v365_v51 = vmul.f32 -1.442695, %v321_v50 }
 0x320   :  { %398 = vpow2.f32 %v365_v51 }
 0x32d   :  { %v399_v52 = vpop.eup %398 }
 0x32e   :  { %v325_v53 = vadd.f32 1.0, %v399_v52 }
 0x330   :  { %400 = vrcp.f32 %v325_v53 }
 0x33d   :  { %v401_v56 = vpop.eup %400 }
 0x33e   :  { %v331_v57 = vrot.slane %v401_v56, %v330_v55 }
 0x340   :  { %v332_v58 = vmul.f32 %v331_v57, %v527_v28 }
 0x342   :  { %333 = vst.msk [vmem:[#allocation8] sm:$0xff] %vm134_vm3, %v332_v58 }
 0x343   :  { %445 = shalt.err (!%p442_p0)
}
 0x344   :  { %343 = dma.vmem_to_hbm [thread:$0]  %s341_s1, 128, %s556_s6, [#allocation5]  }
 0x345   :  { %458 = dma.done.wait [#allocation5], 128  }
 0x346   :  { %459 = vsyncadd [#allocation5], 4294967168 }
 0x347   :  { %347 = vsyncpa [#allocation4], 1 }
 0x348   :  { %348 = vsyncpa [#allocation5], 1 }
 0x349   :  { %349 = vsyncpa [#allocation6], 1 }

</bundles_post_ra>
